<compile_context>
chip_gen: v7x
topology: tpu7x:2x2x1
jax: 0.10.0
libtpu: 0.0.40
codegen_flags: <defaults>
</compile_context>

<pallas_src>
import math

import jax
import jax.numpy as jnp
import numpy as np
from jax.experimental import pallas as pl
from jax.experimental.pallas import tpu as pltpu

d_model = 64
d_ff = 64


def ffn_kernel(x_ref, w1_ref, w2_ref, avg_ref, o_ref):
    x = x_ref[...]                                            # [TM, P*D] f32
    xc = x.astype(w1_ref.dtype)                               # bf16 (or f32)
    h = jnp.maximum(
        jnp.dot(xc, w1_ref[...], preferred_element_type=jnp.float32), 0.0)
    y = jnp.dot(h.astype(w2_ref.dtype), w2_ref[...],
                preferred_element_type=jnp.float32)
    y = y + x                                                 # residual, f32
    # Per-64-lane-segment LayerNorm via one block-diagonal averaging matmul
    # for the mean and one (independent) for the mean of squares.
    a = avg_ref[...]                                          # f32 [P*D, P*D]
    mu = jnp.dot(y, a, preferred_element_type=jnp.float32)
    ms = jnp.dot(y * y, a, preferred_element_type=jnp.float32)
    var = jnp.maximum(ms - mu * mu, 0.0)
    o_ref[...] = ((y - mu) * jax.lax.rsqrt(var + 1e-5)).astype(o_ref.dtype)


def poswise_ffn(x, w1, w2, *, block_rows=4096, pack=2,
                compute_dtype=jnp.bfloat16):
    """x: [B, L, d_model]; w1: [d_model, d_ff]; w2: [d_ff, d_model].

    `pack` tokens are packed per lane-row (pack=2 -> 128 lanes; pack=4 -> 256
    lanes, matching the v6e/v7x MXU tile).  `compute_dtype` is the matmul
    operand dtype (f32 accumulation always); use jnp.float32 for exact parity
    with the PyTorch reference.
    """
    B, L, D = x.shape
    assert D == d_model
    assert w1.shape == (d_model, d_ff) and w2.shape == (d_ff, d_model)

    P = int(pack)
    lanes_in = P * d_model
    lanes_ff = P * d_ff

    # ---- row tiling ---------------------------------------------------
    M = B * L
    rows = pl.cdiv(M, P)                       # packed rows needed
    tm = min(block_rows, rows)
    if tm < rows and tm % 8 != 0:              # (8,128) sublane constraint
        tm = max(8, (tm // 8) * 8)
    # Guarantee >= 2 grid steps when there is enough work (v7x: 2 TCs).
    if rows >= 16 and pl.cdiv(rows, tm) == 1:
        tm = max(8, ((pl.cdiv(rows, 2) + 7) // 8) * 8)
    grid_steps = pl.cdiv(rows, tm)
    rows_pad = grid_steps * tm
    M_pad = rows_pad * P

    # ---- pack activations (lane-dense layout) -------------------------
    x2 = x.reshape(M, D)
    if M_pad != M:
        x2 = jnp.pad(x2, ((0, M_pad - M), (0, 0)))
    xp = x2.reshape(rows_pad, lanes_in)

    # ---- packed (block-diagonal) weights & averaging matrix -----------
    cd = compute_dtype
    w1p = jnp.kron(jnp.eye(P, dtype=cd), w1.astype(cd))         # [P*D, P*Dff]
    w2p = jnp.kron(jnp.eye(P, dtype=cd), w2.astype(cd))         # [P*Dff, P*D]
    avg = jnp.kron(jnp.eye(P, dtype=jnp.float32),
                   jnp.full((d_model, d_model), 1.0 / d_model, jnp.float32))

    out = pl.pallas_call(
        ffn_kernel,
        out_shape=jax.ShapeDtypeStruct((rows_pad, lanes_in), x.dtype),
        grid_spec=pltpu.PrefetchScalarGridSpec(
            num_scalar_prefetch=0,
            grid=(grid_steps,),
            in_specs=[
                pl.BlockSpec((tm, lanes_in), lambda i: (i, 0)),       # x
                pl.BlockSpec((lanes_in, lanes_ff), lambda i: (0, 0)), # W1 packed
                pl.BlockSpec((lanes_ff, lanes_in), lambda i: (0, 0)), # W2 packed
                pl.BlockSpec((lanes_in, lanes_in), lambda i: (0, 0)), # avg matrix
            ],
            out_specs=pl.BlockSpec((tm, lanes_in), lambda i: (i, 0)),
        ),
        compiler_params=pltpu.CompilerParams(
            dimension_semantics=("parallel",)),
    )(xp, w1p, w2p, avg)

    out = out.reshape(M_pad, D)[:M]
    return out.reshape(B, L, D)


def ref_forward(x, w1, w2, eps=1e-5):
    """Pure-JAX reference mirroring PoswiseFeedForwardNet.forward (f32)."""
    y = jnp.maximum(x @ w1, 0.0) @ w2 + x
    mu = jnp.mean(y, axis=-1, keepdims=True)
    var = jnp.mean((y - mu) ** 2, axis=-1, keepdims=True)
    return (y - mu) * jax.lax.rsqrt(var + eps)


if __name__ == "__main__":
    key = jax.random.PRNGKey(0)
    k1, k2, k3 = jax.random.split(key, 3)

    B, L = 2, 8
    x = jax.random.normal(k1, (B, L, d_model), jnp.float32)
    w1 = jax.random.normal(k2, (d_model, d_ff), jnp.float32) * (1.0 / math.sqrt(d_model))
    w2 = jax.random.normal(k3, (d_ff, d_model), jnp.float32) * (1.0 / math.sqrt(d_ff))

    ref = ref_forward(x, w1, w2)

    # Fast path: bf16 matmul operands, f32 accumulation (default).
    out_bf16 = poswise_ffn(x, w1, w2)
    jax.block_until_ready(out_bf16)
    np.testing.assert_allclose(np.array(out_bf16), np.array(ref),
                               atol=5e-2, rtol=5e-2)

    # Exact-parity path: f32 matmul operands.
    out_f32 = poswise_ffn(x, w1, w2, compute_dtype=jnp.float32)
    jax.block_until_ready(out_f32)
    np.testing.assert_allclose(np.array(out_f32), np.array(ref),
                               atol=1e-4, rtol=1e-4)

    print("KERNEL_OK")
</pallas_src>

<mosaic_0001>
module attributes {stable_mosaic.version = 11 : i64} {
  func.func @ffn_kernel(%arg0: i32, %arg1: memref<8x128xf32, #tpu.memory_space<vmem>>, %arg2: memref<128x128xbf16, #tpu.memory_space<vmem>>, %arg3: memref<128x128xbf16, #tpu.memory_space<vmem>>, %arg4: memref<128x128xf32, #tpu.memory_space<vmem>>, %arg5: memref<8x128xf32, #tpu.memory_space<vmem>>) attributes {dimension_semantics = [#tpu.dimension_semantics<parallel>], iteration_bounds = array<i64: 1>, scalar_prefetch = 0 : i64, scratch_operands = 0 : i64, tpu.core_type = #tpu.core_type<tc>, window_params = [{transform_indices = @transform_0, window_bounds = array<i64: 8, 128>}, {pipeline_mode = #tpu.pipeline_mode<synchronous>, transform_indices = @transform_1, window_bounds = array<i64: 128, 128>}, {pipeline_mode = #tpu.pipeline_mode<synchronous>, transform_indices = @transform_2, window_bounds = array<i64: 128, 128>}, {pipeline_mode = #tpu.pipeline_mode<synchronous>, transform_indices = @transform_3, window_bounds = array<i64: 128, 128>}, {transform_indices = @transform_4, window_bounds = array<i64: 8, 128>}]} {
    %c0 = arith.constant 0 : index
    %c0_0 = arith.constant 0 : index
    %0 = vector.load %arg1[%c0, %c0_0] : memref<8x128xf32, #tpu.memory_space<vmem>>, vector<8x128xf32>
    %1 = arith.truncf %0 : vector<8x128xf32> to vector<8x128xbf16>
    %c0_1 = arith.constant 0 : index
    %c0_2 = arith.constant 0 : index
    %2 = vector.load %arg2[%c0_1, %c0_2] : memref<128x128xbf16, #tpu.memory_space<vmem>>, vector<128x128xbf16>
    %cst = arith.constant dense<0.000000e+00> : vector<8x128xf32>
    %3 = tpu.matmul %1, %2, %cst {dimension_numbers = #tpu.dot_dimension_numbers<[1], [0], [0], [1], [0, 0, 1, 1], [], []>} : vector<8x128xbf16>, vector<128x128xbf16>, vector<8x128xf32> -> vector<8x128xf32>
    %cst_3 = arith.constant 0.000000e+00 : f32
    %4 = vector.broadcast %cst_3 : f32 to vector<8x128xf32>
    %5 = arith.maximumf %3, %4 : vector<8x128xf32>
    %6 = arith.truncf %5 : vector<8x128xf32> to vector<8x128xbf16>
    %c0_4 = arith.constant 0 : index
    %c0_5 = arith.constant 0 : index
    %7 = vector.load %arg3[%c0_4, %c0_5] : memref<128x128xbf16, #tpu.memory_space<vmem>>, vector<128x128xbf16>
    %cst_6 = arith.constant dense<0.000000e+00> : vector<8x128xf32>
    %8 = tpu.matmul %6, %7, %cst_6 {dimension_numbers = #tpu.dot_dimension_numbers<[1], [0], [0], [1], [0, 0, 1, 1], [], []>} : vector<8x128xbf16>, vector<128x128xbf16>, vector<8x128xf32> -> vector<8x128xf32>
    %9 = arith.addf %8, %0 : vector<8x128xf32>
    %c0_7 = arith.constant 0 : index
    %c0_8 = arith.constant 0 : index
    %10 = vector.load %arg4[%c0_7, %c0_8] : memref<128x128xf32, #tpu.memory_space<vmem>>, vector<128x128xf32>
    %cst_9 = arith.constant dense<0.000000e+00> : vector<8x128xf32>
    %11 = tpu.matmul %9, %10, %cst_9 {dimension_numbers = #tpu.dot_dimension_numbers<[1], [0], [0], [1], [0, 0, 1, 1], [], []>} : vector<8x128xf32>, vector<128x128xf32>, vector<8x128xf32> -> vector<8x128xf32>
    %12 = arith.mulf %9, %9 : vector<8x128xf32>
    %cst_10 = arith.constant dense<0.000000e+00> : vector<8x128xf32>
    %13 = tpu.matmul %12, %10, %cst_10 {dimension_numbers = #tpu.dot_dimension_numbers<[1], [0], [0], [1], [0, 0, 1, 1], [], []>} : vector<8x128xf32>, vector<128x128xf32>, vector<8x128xf32> -> vector<8x128xf32>
    %14 = arith.mulf %11, %11 : vector<8x128xf32>
    %15 = arith.subf %13, %14 : vector<8x128xf32>
    %cst_11 = arith.constant 0.000000e+00 : f32
    %16 = vector.broadcast %cst_11 : f32 to vector<8x128xf32>
    %17 = arith.maximumf %15, %16 : vector<8x128xf32>
    %18 = arith.subf %9, %11 : vector<8x128xf32>
    %cst_12 = arith.constant 9.99999974E-6 : f32
    %19 = vector.broadcast %cst_12 : f32 to vector<8x128xf32>
    %20 = arith.addf %17, %19 : vector<8x128xf32>
    %21 = math.rsqrt %20 : vector<8x128xf32>
    %22 = arith.mulf %18, %21 : vector<8x128xf32>
    %c0_13 = arith.constant 0 : index
    %c0_14 = arith.constant 0 : index
    %23 = vector.load %arg5[%c0_13, %c0_14] : memref<8x128xf32, #tpu.memory_space<vmem>>, vector<8x128xf32>
    tpu.vector_store %arg5[%c0_13, %c0_14], %22 {strides = array<i32>} : memref<8x128xf32, #tpu.memory_space<vmem>>, vector<8x128xf32>,
    return
  }
  func.func @transform_0(%arg0: i32) -> (i32, i32) {
    %c0_i32 = arith.constant 0 : i32
    %c0_i32_0 = arith.constant 0 : i32
    return %arg0, %c0_i32 : i32, i32
  }
  func.func @transform_1(%arg0: i32) -> (i32, i32) {
    %c0_i32 = arith.constant 0 : i32
    %c0_i32_0 = arith.constant 0 : i32
    %c0_i32_1 = arith.constant 0 : i32
    return %c0_i32, %c0_i32_0 : i32, i32
  }
  func.func @transform_2(%arg0: i32) -> (i32, i32) {
    %c0_i32 = arith.constant 0 : i32
    %c0_i32_0 = arith.constant 0 : i32
    %c0_i32_1 = arith.constant 0 : i32
    return %c0_i32, %c0_i32_0 : i32, i32
  }
  func.func @transform_3(%arg0: i32) -> (i32, i32) {
    %c0_i32 = arith.constant 0 : i32
    %c0_i32_0 = arith.constant 0 : i32
    %c0_i32_1 = arith.constant 0 : i32
    return %c0_i32, %c0_i32_0 : i32, i32
  }
  func.func @transform_4(%arg0: i32) -> (i32, i32) {
    %c0_i32 = arith.constant 0 : i32
    %c0_i32_0 = arith.constant 0 : i32
    return %arg0, %c0_i32 : i32, i32
  }
}

</mosaic_0001>

<bundles_post_ra>
// kernel: tpu_custom_call.1
= control target key start
LH: loop header
LB: loop body
LE: loop exit
PB: predicated region body
PF: predicated region fallthrough
CT: control target
= control target key end

     0   :  { %9 = vsyncpa [#allocation3], 0  ;;  %s972_s0 = inlined_call_operand.hbm [shape: f32[8,128], index: 0, kind: input, shape index: {}]   ;;  %s973_s1 = inlined_call_operand.hbm [shape: bf16[128,128], index: 1, kind: input, shape index: {}]   ;;  %s974_s2 = inlined_call_operand.hbm [shape: bf16[128,128], index: 2, kind: input, shape index: {}]   ;;  %s975_s3 = inlined_call_operand.hbm [shape: f32[128,128], index: 3, kind: input, shape index: {}]   ;;  %s976_s4 = inlined_call_operand.hbm [shape: f32[8,128], index: 4, kind: output, shape index: {}]  }
   0x1   :  { %10 = vsyncpa [#allocation6], 0 }
   0x2   :  { %11 = vsyncpa [#allocation9], 0 }
   0x3   :  { %12 = vsyncpa [#allocation4], 0  ;;  %s840_s15 = smov [#allocation5]   ;;  %s722_s19 = scalar_lea.hbm %s973_s1, 1024 }
   0x4   :  { %s28_s16 = sshll.u32 %s840_s15, 4  ;;  %p723_p0 = scmp.ne.s32.totalorder %s973_s1, %s722_s19  ;;  %s29_s16 = int_to_ptr.vmem [resolvable:$true] %s28_s16 }
   0x5   :  { %p726_p1 = scmp.lt.u32.totalorder %s722_s19, %s973_s1 }
   0x7   :  { %p728_p2 = pnand %p726_p1, %p723_p0 }
   0x9   :  { %731 = shalt.err (!%p728_p2)
}
   0xa   :  { %s732_s24 = scalar_lea.vmem %s29_s16, 1024  ;;  %p737_p4 = scmp.lt.s32.totalorder %s29_s16, %s29_s16 }
   0xb   :  { %p733_p3 = scmp.ne.s32.totalorder %s29_s16, %s732_s24  ;;  %p738_p5 = scmp.lt.s32.totalorder %s732_s24, %s732_s24 }
   0xd   :  { %p739_p6 = por %p738_p5, %p737_p4 }
   0xf   :  { %p740_p7 = pnand %p739_p6, %p733_p3 }
  0x11   :  { %743 = shalt.err (!%p740_p7)
}
  0x12   :  { %s841_s25 = smov 64   ;;  %s842_s26 = smov 4  }
  0x13   :  { %34 = dma.hbm_to_vmem [thread:$0]  %s973_s1, 1024, %s29_s16, [#allocation6], %s841_s25, %s841_s25, %s842_s26  }
  0x14   :  { %s843_s29 = smov [#allocation2]   ;;  %s844_s5 = smov [#allocation7]  }
  0x15   :  { %s19_s30 = sshll.u32 %s843_s29, 4  ;;  %s40_s6 = sshll.u32 %s844_s5, 4  ;;  %s20_s30 = int_to_ptr.vmem [resolvable:$true] %s19_s30  ;;  %s41_s6 = int_to_ptr.vmem [resolvable:$true] %s40_s6 }
  0x16   :  { %s744_s9 = scalar_lea.hbm %s972_s0, 128 }
  0x17   :  { %p745_p8 = scmp.ne.s32.totalorder %s972_s0, %s744_s9  ;;  %p748_p9 = scmp.lt.u32.totalorder %s744_s9, %s972_s0 }
  0x19   :  { %p750_p10 = pnand %p748_p9, %p745_p8 }
  0x1b   :  { %753 = shalt.err (!%p750_p10)
}
  0x1c   :  { %s754_s1 = scalar_lea.vmem %s20_s30, 128  ;;  %p759_p12 = scmp.lt.s32.totalorder %s20_s30, %s20_s30 }
  0x1d   :  { %p755_p11 = scmp.ne.s32.totalorder %s20_s30, %s754_s1  ;;  %p760_p13 = scmp.lt.s32.totalorder %s754_s1, %s754_s1 }
  0x1f   :  { %p761_p0 = por %p760_p13, %p759_p12 }
  0x21   :  { %p762_p1 = pnand %p761_p0, %p755_p11 }
  0x23   :  { %765 = shalt.err (!%p762_p1)
}
  0x24   :  { %22 = dma.hbm_to_vmem [thread:$0]  %s972_s0, 128, %s20_s30, [#allocation3]  }
  0x25   :  { %s766_s18 = scalar_lea.hbm %s974_s2, 1024 }
  0x26   :  { %p767_p2 = scmp.ne.s32.totalorder %s974_s2, %s766_s18  ;;  %p770_p3 = scmp.lt.u32.totalorder %s766_s18, %s974_s2 }
  0x28   :  { %p772_p4 = pnand %p770_p3, %p767_p2 }
  0x2a   :  { %775 = shalt.err (!%p772_p4)
}
  0x2b   :  { %s776_s23 = scalar_lea.vmem %s41_s6, 1024  ;;  %p781_p6 = scmp.lt.s32.totalorder %s41_s6, %s41_s6 }
  0x2c   :  { %p777_p5 = scmp.ne.s32.totalorder %s41_s6, %s776_s23  ;;  %p782_p7 = scmp.lt.s32.totalorder %s776_s23, %s776_s23 }
  0x2e   :  { %p783_p8 = por %p782_p7, %p781_p6 }
  0x30   :  { %p784_p9 = pnand %p783_p8, %p777_p5 }
  0x32   :  { %787 = shalt.err (!%p784_p9)
}
  0x33   :  { %46 = dma.hbm_to_vmem [thread:$0]  %s974_s2, 1024, %s41_s6, [#allocation6], %s841_s25, %s841_s25, %s842_s26  }
  0x34   :  { %s845_s27 = smov [#allocation8]   ;;  %s788_s5 = scalar_lea.hbm %s975_s3, 2048 }
  0x35   :  { %s52_s28 = sshll.u32 %s845_s27, 4  ;;  %p789_p10 = scmp.ne.s32.totalorder %s975_s3, %s788_s5  ;;  %s53_s28 = int_to_ptr.vmem [resolvable:$true] %s52_s28 }
  0x36   :  { %p792_p11 = scmp.lt.u32.totalorder %s788_s5, %s975_s3 }
  0x38   :  { %p794_p12 = pnand %p792_p11, %p789_p10 }
  0x3a   :  { %797 = shalt.err (!%p794_p12)
}
  0x3b   :  { %s798_s11 = scalar_lea.vmem %s53_s28, 2048  ;;  %p803_p0 = scmp.lt.s32.totalorder %s53_s28, %s53_s28 }
  0x3c   :  { %p799_p13 = scmp.ne.s32.totalorder %s53_s28, %s798_s11  ;;  %p804_p1 = scmp.lt.s32.totalorder %s798_s11, %s798_s11 }
  0x3e   :  { %p805_p2 = por %p804_p1, %p803_p0 }
  0x40   :  { %p806_p3 = pnand %p805_p2, %p799_p13 }
  0x42   :  { %809 = shalt.err (!%p806_p3)
}
  0x43   :  { %s846_s2 = smov 128   ;;  %s847_s25 = smov 8  }
  0x44   :  { %58 = dma.hbm_to_vmem [thread:$0]  %s975_s3, 2048, %s53_s28, [#allocation9], %s846_s2, %s846_s2, %s847_s25  }
  0x45   :  { %832 = dma.done.wait [#allocation3], 128  }
  0x46   :  { %833 = vsyncadd [#allocation3], 4294967168 }
  0x47   :  { %834 = dma.done.wait [#allocation6], 2048  }
  0x48   :  { %835 = vsyncadd [#allocation6], 4294965248 }
  0x49   :  { %836 = dma.done.wait [#allocation9], 2048  }
  0x4a   :  { %837 = vsyncadd [#allocation9], 4294965248  ;;  %v848_v0 = vmov 0.0   ;;  %vm849_vm0 = vmmov 0   ;;  %v704_v1 = vld [vmem:[#allocation5] sm:$0xff]   ;;  %v705_v2 = vld [vmem:[#allocation5 + $0x8] sm:$0xff]  }
  0x4b   :  { %534 = vmatprep.subr.bf16.mxu0 %v848_v0  ;;  %550 = vmatprep.mubr.msk.bf16.mxu0 %vm849_vm0, %v848_v0  ;;  %v706_v3 = vld [vmem:[#allocation5 + $0x10] sm:$0xff]   ;;  %v712_v4 = vld [vmem:[#allocation7] sm:$0xff]   ;;  %v707_v5 = vld [vmem:[#allocation5 + $0x18] sm:$0xff]   ;;  %v850_v21 = vmov 0.0|0.0   ;;  %s851_s3 = smov [#allocation10]  }
  0x4c   :  { %554 = vmatprep.subr.bf16.mxu1 %v848_v0  ;;  %570 = vmatprep.mubr.msk.bf16.mxu1 %vm849_vm0, %v848_v0  ;;  %v713_v6 = vld [vmem:[#allocation7 + $0x8] sm:$0xff]   ;;  %v708_v7 = vld [vmem:[#allocation5 + $0x20] sm:$0xff]   ;;  %v714_v8 = vld [vmem:[#allocation7 + $0x10] sm:$0xff]   ;;  %s455_s12 = sshll.u32 %s851_s3, 4  ;;  %s456_s12 = int_to_ptr.vmem [resolvable:$true] %s455_s12 }
  0x4d   :  { %535 = vmatpush3.bf16.msra.mxu0 %v704_v1  ;;  %555 = vmatpush3.bf16.msra.mxu1 %v712_v4  ;;  %v709_v9 = vld [vmem:[#allocation5 + $0x28] sm:$0xff]   ;;  %v715_v10 = vld [vmem:[#allocation7 + $0x18] sm:$0xff]   ;;  %v710_v11 = vld [vmem:[#allocation5 + $0x30] sm:$0xff]   ;;  %s810_s13 = scalar_lea.vmem %s456_s12, 128  ;;  %p815_p5 = scmp.lt.s32.totalorder %s456_s12, %s456_s12 }
  0x4e   :  { %536 = vmatprep.subr.bf16.mxu0 %v848_v0  ;;  %556 = vmatprep.subr.bf16.mxu1 %v848_v0  ;;  %v716_v12 = vld [vmem:[#allocation7 + $0x20] sm:$0xff]   ;;  %v711_v13 = vld [vmem:[#allocation5 + $0x38] sm:$0xff]   ;;  %v717_v15 = vld [vmem:[#allocation7 + $0x28] sm:$0xff]   ;;  %p811_p4 = scmp.ne.s32.totalorder %s456_s12, %s810_s13  ;;  %p816_p6 = scmp.lt.s32.totalorder %s810_s13, %s810_s13 }
  0x4f   :  { %v947_v14 = vld [vmem:[#allocation2] sm:$0xff]  ;;  %v718_v17 = vld [vmem:[#allocation7 + $0x30] sm:$0xff]   ;;  %v284_v19 = vld [vmem:[#allocation8] sm:$0xff] }
  0x50   :  { %v73_v16 = vpack.c.bf16 %v947_v14, %v947_v14  ;;  %v719_v18 = vld [vmem:[#allocation7 + $0x38] sm:$0xff]   ;;  %v285_v20 = vld [vmem:[#allocation8 + $0x8] sm:$0xff]  ;;  %v286_v23 = vld [vmem:[#allocation8 + $0x10] sm:$0xff]  ;;  %p817_p7 = por %p816_p6, %p815_p5 }
  0x51   :  { %537 = vmatpush3.bf16.msra.mxu0 %v705_v2  ;;  %557 = vmatpush3.bf16.msra.mxu1 %v713_v6  ;;  %v645_v22 = vpack.c.bf16 %v285_v20, %v284_v19  ;;  %v287_v24 = vld [vmem:[#allocation8 + $0x18] sm:$0xff]  ;;  %v288_v26 = vld [vmem:[#allocation8 + $0x20] sm:$0xff]  ;;  %v289_v27 = vld [vmem:[#allocation8 + $0x28] sm:$0xff] }
  0x52   :  { %538 = vmatprep.subr.bf16.mxu0 %v848_v0  ;;  %558 = vmatprep.subr.bf16.mxu1 %v848_v0  ;;  %v648_v25 = vpack.c.bf16 %v287_v24, %v286_v23  ;;  %v651_v28 = vpack.c.bf16 %v289_v27, %v288_v26  ;;  %v290_v29 = vld [vmem:[#allocation8 + $0x30] sm:$0xff]  ;;  %v291_v30 = vld [vmem:[#allocation8 + $0x38] sm:$0xff]  ;;  %v292_v32 = vld [vmem:[#allocation8 + $0x40] sm:$0xff]  ;;  %p818_p8 = pnand %p817_p7, %p811_p4 }
  0x53   :  { %v654_v31 = vpack.c.bf16 %v291_v30, %v290_v29  ;;  %v293_v33 = vld [vmem:[#allocation8 + $0x48] sm:$0xff]  ;;  %v294_v35 = vld [vmem:[#allocation8 + $0x50] sm:$0xff]  ;;  %v295_v36 = vld [vmem:[#allocation8 + $0x58] sm:$0xff] }
  0x54   :  { %v657_v34 = vpack.c.bf16 %v293_v33, %v292_v32  ;;  %v660_v37 = vpack.c.bf16 %v295_v36, %v294_v35  ;;  %v296_v38 = vld [vmem:[#allocation8 + $0x60] sm:$0xff]  ;;  %v297_v39 = vld [vmem:[#allocation8 + $0x68] sm:$0xff]  ;;  %v298_v47 = vld [vmem:[#allocation8 + $0x70] sm:$0xff] }
  0x55   :  { %539 = vmatpush3.bf16.msra.mxu0 %v706_v3  ;;  %559 = vmatpush3.bf16.msra.mxu1 %v714_v8  ;;  %v663_v40 = vpack.c.bf16 %v297_v39, %v296_v38  ;;  %v299_v48 = vld [vmem:[#allocation8 + $0x78] sm:$0xff] }
  0x56   :  { %540 = vmatprep.subr.bf16.mxu0 %v848_v0  ;;  %560 = vmatprep.subr.bf16.mxu1 %v848_v0  ;;  %v666_v49 = vpack.c.bf16 %v299_v48, %v298_v47 }
  0x59   :  { %541 = vmatpush3.bf16.msra.mxu0 %v707_v5  ;;  %561 = vmatpush3.bf16.msra.mxu1 %v715_v10 }
  0x5a   :  { %542 = vmatprep.subr.bf16.mxu0 %v848_v0  ;;  %562 = vmatprep.subr.bf16.mxu1 %v848_v0 }
  0x5d   :  { %543 = vmatpush3.bf16.msra.mxu0 %v708_v7  ;;  %563 = vmatpush3.bf16.msra.mxu1 %v716_v12 }
  0x5e   :  { %544 = vmatprep.subr.bf16.mxu0 %v848_v0  ;;  %564 = vmatprep.subr.bf16.mxu1 %v848_v0 }
  0x61   :  { %545 = vmatpush3.bf16.msra.mxu0 %v709_v9  ;;  %565 = vmatpush3.bf16.msra.mxu1 %v717_v15 }
  0x62   :  { %546 = vmatprep.subr.bf16.mxu0 %v848_v0  ;;  %566 = vmatprep.subr.bf16.mxu1 %v848_v0 }
  0x65   :  { %547 = vmatpush3.bf16.msra.mxu0 %v710_v11  ;;  %567 = vmatpush3.bf16.msra.mxu1 %v718_v17 }
  0x66   :  { %548 = vmatprep.subr.bf16.mxu0 %v848_v0  ;;  %568 = vmatprep.subr.bf16.mxu1 %v848_v0 }
  0x69   :  { %549 = vmatpush3.bf16.msra.mxu0 %v711_v13  ;;  %569 = vmatpush3.bf16.msra.mxu1 %v719_v18 }
  0x6a   :  { %644 = vmatprep.subr.bf16.mxu0 %v850_v21  ;;  %668 = vmatprep.subr.bf16.mxu1 %v850_v21 }
  0x6c   :  { %551 = vmatmul.mubr.bf16.vlgmr.msra.gmra.mrb[0].mxu0 %v73_v16 }
  0x6d   :  { %606 = vmatprep.mubr.msk.f32.mxu0 %vm849_vm0, %v848_v0  ;;  %646 = vmatpush3.bf16.msra.mxu0 %v645_v22 }
  0x6e   :  { %647 = vmatprep.subr.bf16.mxu0 %v850_v21 }
  0x71   :  { %649 = vmatpush3.bf16.msra.mxu0 %v648_v25 }
  0x72   :  { %650 = vmatprep.subr.bf16.mxu0 %v850_v21 }
  0x75   :  { %652 = vmatpush3.bf16.msra.mxu0 %v651_v28 }
  0x76   :  { %653 = vmatprep.subr.bf16.mxu0 %v850_v21 }
  0x79   :  { %655 = vmatpush3.bf16.msra.mxu0 %v654_v31 }
  0x7a   :  { %656 = vmatprep.subr.bf16.mxu0 %v850_v21 }
  0x7d   :  { %658 = vmatpush3.bf16.msra.mxu0 %v657_v34 }
  0x7e   :  { %659 = vmatprep.subr.bf16.mxu0 %v850_v21 }
  0x81   :  { %661 = vmatpush3.bf16.msra.mxu0 %v660_v37 }
  0x82   :  { %662 = vmatprep.subr.bf16.mxu0 %v850_v21 }
  0x85   :  { %664 = vmatpush3.bf16.msra.mxu0 %v663_v40 }
  0x86   :  { %665 = vmatprep.subr.bf16.mxu0 %v850_v21 }
  0x89   :  { %667 = vmatpush3.bf16.msra.mxu0 %v666_v49 }
 0x13f   :  { %v172_v41 = vpop.f32.mrb[0].mxu0 }
 0x140   :  { %v178_v42 = vmax.f32 %v172_v41, 0.0  ;;  %v552_v43 = vpop.f32.mrb[1].mxu0 }
 0x141   :  { %v175_v44 = vpop.f32.mrb[2].mxu0 }
 0x142   :  { %v179_v45 = vpack.c.bf16 %v178_v42, %v178_v42  ;;  %v553_v46 = vpop.f32.mrb[3].mxu0 }
 0x144   :  { %571 = vmatmul.mubr.bf16.vlgmr.msra.gmra.mrb[0].mxu1 %v179_v45 }
 0x145   :  { %670 = vmatpush3.bf16.msra.mxu1 %v645_v22  ;;  %641 = vmatprep.mubr.msk.f32.mxu1 %vm849_vm0, %v848_v0 }
 0x146   :  { %671 = vmatprep.subr.bf16.mxu1 %v850_v21 }
 0x149   :  { %673 = vmatpush3.bf16.msra.mxu1 %v648_v25 }
 0x14a   :  { %674 = vmatprep.subr.bf16.mxu1 %v850_v21 }
 0x14d   :  { %676 = vmatpush3.bf16.msra.mxu1 %v651_v28 }
 0x14e   :  { %677 = vmatprep.subr.bf16.mxu1 %v850_v21 }
 0x151   :  { %679 = vmatpush3.bf16.msra.mxu1 %v654_v31 }
 0x152   :  { %680 = vmatprep.subr.bf16.mxu1 %v850_v21 }
 0x155   :  { %682 = vmatpush3.bf16.msra.mxu1 %v657_v34 }
 0x156   :  { %683 = vmatprep.subr.bf16.mxu1 %v850_v21 }
 0x159   :  { %685 = vmatpush3.bf16.msra.mxu1 %v660_v37 }
 0x15a   :  { %686 = vmatprep.subr.bf16.mxu1 %v850_v21 }
 0x15d   :  { %688 = vmatpush3.bf16.msra.mxu1 %v663_v40 }
 0x15e   :  { %689 = vmatprep.subr.bf16.mxu1 %v850_v21 }
 0x161   :  { %691 = vmatpush3.bf16.msra.mxu1 %v666_v49 }
 0x217   :  { %v278_v50 = vpop.f32.mrb[0].mxu1 }
 0x218   :  { %v279_v51 = vadd.f32 %v278_v50, %v947_v14  ;;  %v572_v52 = vpop.f32.mrb[1].mxu1 }
 0x219   :  { %v281_v53 = vpop.f32.mrb[2].mxu1 }
 0x21a   :  { %v370_v54 = vmul.f32 %v279_v51, %v279_v51  ;;  %v573_v55 = vpop.f32.mrb[3].mxu1  ;;  %607 = vmatmul.mubr.f32.vlgmr.msra.gmra.mrb[4].mxu0 %v279_v51 }
 0x21c   :  { %642 = vmatmul.mubr.f32.vlgmr.msra.gmra.mrb[4].mxu1 %v370_v54 }
 0x2ed   :  { %v366_v56 = vpop.f32.mrb[4].mxu0 }
 0x2ee   :  { %v441_v57 = vmul.f32 %v366_v56, %v366_v56  ;;  %v608_v58 = vpop.f32.mrb[5].mxu0  ;;  %v444_v0 = vsub.f32 %v279_v51, %v366_v56 }
 0x2ef   :  { %v437_v59 = vpop.f32.mrb[4].mxu1 }
 0x2f0   :  { %v442_v60 = vsub.f32 %v437_v59, %v441_v57  ;;  %v643_v61 = vpop.f32.mrb[5].mxu1 }
 0x2f2   :  { %v443_v62 = vmax.f32 %v442_v60, 0.0 }
 0x2f4   :  { %v445_v63 = vadd.f32 1e-05, %v443_v62 }
 0x2f6   :  { %720 = vrsqrt.f32 %v445_v63 }
 0x300   :  { %v721_v1 = vpop.eup %720 }
 0x301   :  { %v447_v2 = vmul.f32 %v721_v1, %v444_v0 }
 0x303   :  { %448 = vst [vmem:[#allocation10] sm:$0xff] %v447_v2 }
 0x304   :  { %821 = shalt.err (!%p818_p8)
}
 0x305   :  { %s822_s15 = scalar_lea.hbm %s976_s4, 128 }
 0x306   :  { %p823_p9 = scmp.ne.s32.totalorder %s976_s4, %s822_s15  ;;  %p826_p10 = scmp.lt.u32.totalorder %s822_s15, %s976_s4 }
 0x308   :  { %p828_p11 = pnand %p826_p10, %p823_p9 }
 0x30a   :  { %831 = shalt.err (!%p828_p11)
}
 0x30b   :  { %458 = dma.vmem_to_hbm [thread:$0]  %s456_s12, 128, %s976_s4, [#allocation4]  }
 0x30c   :  { %838 = dma.done.wait [#allocation4], 128  }
 0x30d   :  { %839 = vsyncadd [#allocation4], 4294967168 }
 0x30e   :  { %462 = vsyncpa [#allocation3], 1 }
 0x30f   :  { %463 = vsyncpa [#allocation6], 1 }
 0x310   :  { %464 = vsyncpa [#allocation9], 1 }
 0x311   :  { %465 = vsyncpa [#allocation4], 1 }

</bundles_post_ra>
